<compile_context>
chip_gen: v7x
topology: tpu7x:2x2x1
jax: 0.10.0
libtpu: 0.0.40
codegen_flags: <defaults>
</compile_context>

<pallas_src>
import jax
import jax.numpy as jnp
from jax.experimental import pallas as pl
from jax.experimental.pallas import tpu as pltpu


def _split_kernel(y_ref, even_ref, odd_ref):
    # y_ref:    (1, tile_t, 2*C) VMEM tile of the pair-reshaped input
    # even_ref: (1, tile_t, C)
    # odd_ref:  (1, tile_t, C)
    c = even_ref.shape[-1]
    y = y_ref[...]
    even_ref[...] = y[:, :, :c]   # time steps 0, 2, 4, ...
    odd_ref[...] = y[:, :, c:]    # time steps 1, 3, 5, ...


def _choose_tile_t(t_half: int, c2: int, itemsize: int) -> int:
    """Rows per block along the halved time axis.

    Must be a multiple of 8 (sublane tiling) or equal to the full extent.
    Target ~4 MiB per input block, capped at 1024 rows (keeps total live
    VMEM with double-buffered in + 2 outs well under the 32 MiB scoped
    default, including on v7x).
    """
    if t_half % 8 != 0:
        return t_half  # full-extent block satisfies the layout rule
    target_bytes = 4 * 1024 * 1024
    rows = target_bytes // max(1, c2 * itemsize)
    rows = min(t_half, 1024, max(8, (rows // 8) * 8))
    return rows


def splitting(x: jax.Array):
    """Pallas equivalent of Splitting.forward: returns (even, odd)."""
    B, T, C = x.shape
    assert T % 2 == 0, "time dimension must be even for a clean split"
    t_half = T // 2
    itemsize = jnp.dtype(x.dtype).itemsize

    # Free contiguous reshape: row t of y holds (x[2t], x[2t+1]) along lanes.
    y = x.reshape(B, t_half, 2 * C)

    tile_t = _choose_tile_t(t_half, 2 * C, itemsize)
    grid = (B, pl.cdiv(t_half, tile_t))

    out_shapes = (
        jax.ShapeDtypeStruct((B, t_half, C), x.dtype),
        jax.ShapeDtypeStruct((B, t_half, C), x.dtype),
    )

    cost = pl.CostEstimate(
        flops=0,
        transcendentals=0,
        bytes_accessed=2 * B * T * C * itemsize,  # read + write
    )

    return pl.pallas_call(
        _split_kernel,
        out_shape=out_shapes,
        grid_spec=pltpu.PrefetchScalarGridSpec(
            num_scalar_prefetch=0,
            grid=grid,
            in_specs=[
                pl.BlockSpec((1, tile_t, 2 * C), lambda b, t: (b, t, 0)),
            ],
            out_specs=[
                pl.BlockSpec((1, tile_t, C), lambda b, t: (b, t, 0)),
                pl.BlockSpec((1, tile_t, C), lambda b, t: (b, t, 0)),
            ],
        ),
        compiler_params=pltpu.CompilerParams(
            dimension_semantics=("parallel", "parallel"),
        ),
        cost_estimate=cost,
    )(y)


if __name__ == "__main__":
    key = jax.random.PRNGKey(0)
    B, T, C = 2, 8, 16  # small shapes: batch=2, seq=8, channels=16
    x = jax.random.normal(key, (B, T, C), dtype=jnp.float32)

    even, odd = splitting(x)
    jax.block_until_ready((even, odd))

    # Reference check against plain JAX slicing (same semantics as PyTorch).
    even_ref = x[:, ::2, :]
    odd_ref = x[:, 1::2, :]
    assert even.shape == (B, T // 2, C) and odd.shape == (B, T // 2, C)
    assert jnp.array_equal(even, even_ref)
    assert jnp.array_equal(odd, odd_ref)

    # A second, larger/tiled-path sanity check (exercises the time-tiling).
    B2, T2, C2 = 2, 2048, 128
    x2 = jax.random.normal(jax.random.PRNGKey(1), (B2, T2, C2), dtype=jnp.float32)
    e2, o2 = splitting(x2)
    jax.block_until_ready((e2, o2))
    assert jnp.array_equal(e2, x2[:, ::2, :])
    assert jnp.array_equal(o2, x2[:, 1::2, :])

    print("KERNEL_OK")
</pallas_src>

<mosaic_0001>
module attributes {stable_mosaic.version = 11 : i64} {
  func.func @_split_kernel(%arg0: i32, %arg1: i32, %arg2: memref<1x4x32xf32, #tpu.memory_space<vmem>>, %arg3: memref<1x4x16xf32, #tpu.memory_space<vmem>>, %arg4: memref<1x4x16xf32, #tpu.memory_space<vmem>>) attributes {dimension_semantics = [#tpu.dimension_semantics<parallel>, #tpu.dimension_semantics<parallel>], iteration_bounds = array<i64: 2, 1>, scalar_prefetch = 0 : i64, scratch_operands = 0 : i64, tpu.core_type = #tpu.core_type<tc>, window_params = [{transform_indices = @transform_0, window_bounds = array<i64: 1, 4, 32>}, {transform_indices = @transform_1, window_bounds = array<i64: 1, 4, 16>}, {transform_indices = @transform_2, window_bounds = array<i64: 1, 4, 16>}]} {
    %c0 = arith.constant 0 : index
    %c0_0 = arith.constant 0 : index
    %c0_1 = arith.constant 0 : index
    %0 = vector.load %arg2[%c0, %c0_0, %c0_1] : memref<1x4x32xf32, #tpu.memory_space<vmem>>, vector<1x4x32xf32>
    %1 = vector.extract_strided_slice %0 {offsets = [0, 0, 0], sizes = [1, 4, 16], strides = [1, 1, 1]} : vector<1x4x32xf32> to vector<1x4x16xf32>
    %c0_2 = arith.constant 0 : index
    %c0_3 = arith.constant 0 : index
    %c0_4 = arith.constant 0 : index
    %2 = vector.load %arg3[%c0_2, %c0_3, %c0_4] : memref<1x4x16xf32, #tpu.memory_space<vmem>>, vector<1x4x16xf32>
    tpu.vector_store %arg3[%c0_2, %c0_3, %c0_4], %1 {strides = array<i32>} : memref<1x4x16xf32, #tpu.memory_space<vmem>>, vector<1x4x16xf32>,
    %3 = vector.extract_strided_slice %0 {offsets = [0, 0, 16], sizes = [1, 4, 16], strides = [1, 1, 1]} : vector<1x4x32xf32> to vector<1x4x16xf32>
    %c0_5 = arith.constant 0 : index
    %c0_6 = arith.constant 0 : index
    %c0_7 = arith.constant 0 : index
    %4 = vector.load %arg4[%c0_5, %c0_6, %c0_7] : memref<1x4x16xf32, #tpu.memory_space<vmem>>, vector<1x4x16xf32>
    tpu.vector_store %arg4[%c0_5, %c0_6, %c0_7], %3 {strides = array<i32>} : memref<1x4x16xf32, #tpu.memory_space<vmem>>, vector<1x4x16xf32>,
    return
  }
  func.func @transform_0(%arg0: i32, %arg1: i32) -> (i32, i32, i32) {
    %c0_i32 = arith.constant 0 : i32
    %c0_i32_0 = arith.constant 0 : i32
    return %arg0, %arg1, %c0_i32 : i32, i32, i32
  }
  func.func @transform_1(%arg0: i32, %arg1: i32) -> (i32, i32, i32) {
    %c0_i32 = arith.constant 0 : i32
    %c0_i32_0 = arith.constant 0 : i32
    return %arg0, %arg1, %c0_i32 : i32, i32, i32
  }
  func.func @transform_2(%arg0: i32, %arg1: i32) -> (i32, i32, i32) {
    %c0_i32 = arith.constant 0 : i32
    %c0_i32_0 = arith.constant 0 : i32
    return %arg0, %arg1, %c0_i32 : i32, i32, i32
  }
}

</mosaic_0001>

<bundles_post_ra>
// kernel: tpu_custom_call.1
= control target key start
LH: loop header
LB: loop body
LE: loop exit
PB: predicated region body
PF: predicated region fallthrough
CT: control target
= control target key end

     0   :  { %8 = vsyncpa [#allocation3], 0  ;;  %s805_s0 = inlined_call_operand.hbm [shape: f32[2,4,32], index: 0, kind: input, shape index: {}]   ;;  %s806_s1 = inlined_call_operand.hbm [shape: f32[2,4,16], index: 1, kind: output, shape index: {0}]   ;;  %s807_s2 = inlined_call_operand.hbm [shape: f32[2,4,16], index: 2, kind: output, shape index: {1}]  }
   0x1   :  { %10 = vsyncpa [#allocation3 + $0x1], 0 }
   0x2   :  { %11 = vsyncpa [#allocation4], 0 }
   0x3   :  { %13 = vsyncpa [#allocation4 + $0x1], 0 }
   0x4   :  { %14 = vsyncpa [#allocation7], 0 }
   0x5   :  { %16 = vsyncpa [#allocation7 + $0x1], 0  ;;  %s593_s9 = smov 0   ;;  %s595_s10 = smov 0  }
   0x6   :  { %s597_s11 = smov 0   ;;  %s599_s12 = smov 0  }
   0x7   :  { %s601_s13 = smov 0   ;;  %s603_s14 = smov 0  }
   0x8 LB: > { %s344_s15 = sadd.s32 4294967295, %s572_s14   ;;  %s345_s16 = sadd.s32 4294967294, %s572_s14   ;;  %s572_s14 = sphi %s603_s14, %s22_s14   ;;  %s568_s13 = sphi %s601_s13, %s823_s13   ;;  %s564_s12 = sphi %s599_s12, %s822_s12   ;;  %s560_s11 = sphi %s597_s11, %s821_s11   ;;  %s556_s10 = sphi %s595_s10, %s820_s10   ;;  %s552_s9 = sphi %s593_s9, %s819_s9  }
   0x9   : > { %s34_s17 = sadd.s32 1, %s568_s13  ;;  %s43_s18 = sadd.s32 1, %s560_s11 }
   0xa   : > { %p36_p0 = scmp.ge.s32.totalorder %s34_s17, 2  ;;  %p50_p1 = scmp.ne.s32.totalorder %s560_s11, %s556_s10 }
   0xb   : > { %p51_p2 = scmp.eq.s32.totalorder %s572_s14, 0  ;;  %p56_p3 = scmp.ne.s32.totalorder %s556_s10, %s552_s9 }
   0xc   : > { %s825_s17 = smov (%p36_p0, %s34_s17), 0  ;;  %p57_p5 = scmp.eq.s32.totalorder %s344_s15, 0 }
   0xd   : > { %p634_p4 = por %p51_p2, %p50_p1  ;;  %s38_s20 = ssub.s32 %s568_s13, %s825_s17 }
   0xe   : > { %p82_p6 = scmp.eq.s32.totalorder %s344_s15, 1  ;;  %p41_p7 = scmp.eq.s32.totalorder %s38_s20, 0 }
   0xf   : > { %p640_p8 = por %p57_p5, %p56_p3  ;;  %p88_p10 = scmp.eq.s32.totalorder %s345_s16, 1 }
  0x10   : > { %p644_p9 = por %p82_p6, %p50_p1  ;;  %p377_p13 = scmp.lt.s32.totalorder %s572_s14, 2 }
  0x11   : > { %s649_s23 = scalar_select %p41_p7, %s560_s11, %s43_s18  }
  0x12   : > { %s811_s22 = scalar_select %p644_p9, 1, 0 }
  0x13   : > { %p651_p11 = por %p88_p10, %p56_p3  ;;  %s136_s25 = sand.u32 1, %s560_s11  }
  0x14   : > { %s348_s26 = sshll.u32 %s136_s25, 2  ;;  %s349_s27 = sshll.u32 %s568_s13, 6 }
  0x15   : > { %s812_s24 = scalar_select %p651_p11, 1, 0 }
  0x16   : > { %s662_s30 = scalar_lea.hbm %s805_s0, %s349_s27  ;;  %s140_s3 = scalar_lea.vmem [#allocation2], %s348_s26 }
  0x17   : > { %s148_s4 = sshll.u32 %s140_s3, 4  ;;  %p668_p0 = pnand %p377_p13, %p634_p4  ;;  %s664_s4 = int_to_ptr.vmem [resolvable:$true] %s148_s4 }
  0x18   : > { %s137_s6 = scalar_lea.sflag [#allocation3], %s136_s25  ;;  %s428_s7 = scalar_lea.hbm %s662_s30, 64 }
  0x19   : > { %p429_p3 = scmp.ne.s32.totalorder %s662_s30, %s428_s7  ;;  %p430_p5 = pneg %p668_p0 }
  0x1a   : > { %s433_s16 = scalar_lea.hbm %s805_s0, 128  ;;  %p434_p4 = scmp.lt.u32.totalorder %s662_s30, %s805_s0 }
  0x1b   : > { %p431_p6 = pnand %p430_p5, %p429_p3  ;;  %p435_p10 = scmp.lt.u32.totalorder %s433_s16, %s428_s7 }
  0x1c   : > { %p437_p12 = scmp.lt.u32.totalorder %s428_s7, %s662_s30 }
  0x1d   : > { %p432_p7 = pneg %p431_p6  ;;  %p436_p13 = por %p435_p10, %p434_p4 }
  0x1f   : > { %p438_p1 = por %p437_p12, %p436_p13 }
  0x21   : > { %p439_p2 = pnand %p438_p1, %p432_p7 }
  0x23   : > { %442 = shalt.err (!%p439_p2)
}
  0x24   : > { %s443_s20 = scalar_lea.vmem %s664_s4, 64  ;;  %s574_s25 = smov [#allocation2]  }
  0x25   : > { %p444_p3 = scmp.ne.s32.totalorder %s664_s4, %s443_s20  ;;  %s448_s26 = sshll.u32 %s574_s25, 4  ;;  %s449_s26 = int_to_ptr.vmem [resolvable:$false] %s448_s26 }
  0x26   : > { %s450_s27 = scalar_lea.vmem %s449_s26, 128  ;;  %p451_p9 = scmp.lt.s32.totalorder %s664_s4, %s449_s26 }
  0x27   : > { %p446_p6 = pnand %p444_p3, %p430_p5  ;;  %p452_p4 = scmp.lt.s32.totalorder %s450_s27, %s443_s20 }
  0x29   : > { %p447_p11 = pneg %p446_p6  ;;  %p453_p10 = por %p452_p4, %p451_p9 }
  0x2b   : > { %p454_p12 = pnand %p453_p10, %p447_p11 }
  0x2d   : > { %457 = shalt.err (!%p454_p12)
}
  0x2e   : > { %369 = dma.hbm_to_vmem [thread:$0]  (!%p668_p0), %s662_s30, 64, %s664_s4, %s137_s6  }
  0x2f   : > { %p814_p1 = scmp.lt.s32.totalorder %s572_s14, 3  ;;  %p815_p2 = scmp.ge.s32.totalorder %s572_s14, 1 }
  0x31   : > { %p154_p5 = pnand %p815_p2, %p814_p1 }
  0x32   : > { %s704_s28 = sand.u32 (!%p154_p5), 1, %s556_s10  }
  0x33   : > { %157 = sbr.rel (%p154_p5) target bundleno = 191 (0xbf), region = 24  ;;  %s707_s29 = sshll.u32 (!%p154_p5), %s704_s28, 2 }
  0x34   : > { %s160_s3 = scalar_lea.sflag (!%p154_p5), [#allocation3], %s704_s28  ;;  %s163_s5 = scalar_lea.vmem (!%p154_p5), [#allocation2], %s707_s29 }
  0x3a   : > { %539 = dma.done.wait (%p640_p8), %s160_s3, 64  }
  0x3b   : > { %541 = vsyncadd (%p640_p8), %s160_s3, 4294967232  ;;  %s356_s30 = sshll.u32 %s564_s12, 6  ;;  %s181_s4 = scalar_lea.vmem [#allocation5], %s707_s29  ;;  %vm190_vm0 = vcmask 125952   ;;  %v189_v0 = vld [vmem:[%s163_s5] sm:$0xf] }
  0x3c   : > { %s217_s6 = sshll.u32 %s181_s4, 4  ;;  %s722_s15 = scalar_lea.hbm %s806_s1, %s356_s30  ;;  %191 = vst.msk [vmem:[%s181_s4] sm:$0xf] %vm190_vm0, %v189_v0  ;;  %s724_s6 = int_to_ptr.vmem [resolvable:$true] %s217_s6 }
  0x3d   : > { %s575_s21 = smov 112   ;;  %s198_s16 = scalar_lea.sflag [#allocation4], %s704_s28 }
  0x3e   : > { %193 = vrot.lane.b32.xlu0 %v189_v0, %s575_s21  ;;  %s458_s18 = scalar_lea.vmem %s724_s6, 64  ;;  %p816_p9 = scmp.ne.s32.totalorder %s811_s22, 0 }
  0x3f   : > { %p459_p8 = scmp.ne.s32.totalorder %s724_s6, %s458_s18  ;;  %s576_s19 = smov [#allocation5]  }
  0x40   : > { %s462_s20 = sshll.u32 %s576_s19, 4  ;;  %s463_s20 = int_to_ptr.vmem [resolvable:$false] %s462_s20 }
  0x41   : > { %p460_p11 = pnand %p459_p8, %p816_p9  ;;  %s464_s25 = scalar_lea.vmem %s463_s20, 128 }
  0x42   : > { %p465_p7 = scmp.lt.s32.totalorder %s724_s6, %s463_s20  ;;  %p466_p13 = scmp.lt.s32.totalorder %s464_s25, %s458_s18 }
  0x43   : > { %p461_p0 = pneg %p460_p11 }
  0x44   : > { %p467_p3 = por %p466_p13, %p465_p7 }
  0x46   : > { %p468_p6 = pnand %p467_p3, %p461_p0 }
  0x48   : > { %471 = shalt.err (!%p468_p6)
}
  0x49   : > { %s472_s26 = scalar_lea.hbm %s722_s15, 64  ;;  %s476_s5 = scalar_lea.hbm %s806_s1, 128 }
  0x4a   : > { %p473_p4 = scmp.ne.s32.totalorder %s722_s15, %s472_s26  ;;  %p477_p1 = scmp.lt.u32.totalorder %s722_s15, %s806_s1 }
  0x4b   : > { %p478_p2 = scmp.lt.u32.totalorder %s476_s5, %s472_s26  ;;  %p480_p8 = scmp.lt.u32.totalorder %s472_s26, %s722_s15 }
  0x4c   : > { %p474_p10 = pnand %p473_p4, %p816_p9 }
  0x4d   : > { %p479_p5 = por %p478_p2, %p477_p1 }
  0x4e   : > { %p475_p12 = pneg %p474_p10 }
  0x4f   : > { %p481_p11 = por %p480_p8, %p479_p5 }
  0x51   : > { %p482_p0 = pnand %p481_p11, %p475_p12 }
  0x53   : > { %485 = shalt.err (!%p482_p0)
}
  0x54   : > { %362 = dma.vmem_to_hbm [thread:$0]  (%p816_p9), %s724_s6, 64, %s722_s15, %s198_s16  }
  0x55   : > { %s188_s8 = scalar_lea.vmem [#allocation6], %s707_s29  ;;  %s755_s20 = scalar_lea.hbm %s807_s2, %s356_s30 }
  0x56   : > { %s231_s21 = sshll.u32 %s188_s8, 4  ;;  %s203_s25 = scalar_lea.sflag [#allocation7], %s704_s28  ;;  %s757_s21 = int_to_ptr.vmem [resolvable:$true] %s231_s21 }
  0x57   : > { %s486_s26 = scalar_lea.vmem %s757_s21, 64  ;;  %s577_s12 = smov [#allocation6]  }
  0x58   : > { %p487_p7 = scmp.ne.s32.totalorder %s757_s21, %s486_s26  ;;  %s490_s29 = sshll.u32 %s577_s12, 4  ;;  %s491_s29 = int_to_ptr.vmem [resolvable:$false] %s490_s29 }
  0x59   : > { %s492_s6 = scalar_lea.vmem %s491_s29, 128  ;;  %p493_p6 = scmp.lt.s32.totalorder %s757_s21, %s491_s29 }
  0x5a   : > { %p488_p13 = pnand %p487_p7, %p816_p9  ;;  %p494_p4 = scmp.lt.s32.totalorder %s492_s6, %s486_s26 }
  0x5c   : > { %p489_p3 = pneg %p488_p13  ;;  %p495_p10 = por %p494_p4, %p493_p6 }
  0x5e   : > { %p496_p12 = pnand %p495_p10, %p489_p3 }
  0xb0   : > { %v194_v1 = vpop.permute.xlu0 %193 }
  0xb1   : > { %196 = vst.msk [vmem:[%s188_s8] sm:$0xf] %vm190_vm0, %v194_v1 }
  0xb2   : > { %499 = shalt.err (!%p496_p12)
}
  0xb3   : > { %s500_s28 = scalar_lea.hbm %s755_s20, 64  ;;  %s504_s16 = scalar_lea.hbm %s807_s2, 128 }
  0xb4   : > { %p501_p1 = scmp.ne.s32.totalorder %s755_s20, %s500_s28  ;;  %p505_p8 = scmp.lt.u32.totalorder %s755_s20, %s807_s2 }
  0xb5   : > { %p506_p11 = scmp.lt.u32.totalorder %s504_s16, %s500_s28  ;;  %p508_p7 = scmp.lt.u32.totalorder %s500_s28, %s755_s20 }
  0xb6   : > { %p502_p2 = pnand %p501_p1, %p816_p9 }
  0xb7   : > { %p507_p0 = por %p506_p11, %p505_p8 }
  0xb8   : > { %p503_p5 = pneg %p502_p2 }
  0xb9   : > { %p509_p13 = por %p508_p7, %p507_p0 }
  0xbb   : > { %p510_p3 = pnand %p509_p13, %p503_p5 }
  0xbd   : > { %513 = shalt.err (!%p510_p3)
}
  0xbe   : > { %363 = dma.vmem_to_hbm [thread:$0]  (%p816_p9), %s757_s21, 64, %s755_s20, %s203_s25  }
  0xbf PF: > { %s243_s5 = sand.u32 1, %s552_s9   ;;  %p817_p6 = scmp.ne.s32.totalorder %s812_s24, 0 }
  0xc0   : > { %p818_p4 = scmp.ge.s32.totalorder %s572_s14, 2  ;;  %s244_s4 = scalar_lea.sflag [#allocation4], %s243_s5 }
  0xc2   : > { %p371_p10 = pnand %p818_p4, %p817_p6 }
  0xc4   : > { %543 = dma.done.wait (!%p371_p10), %s244_s4, 64  }
  0xc5   : > { %545 = vsyncadd (!%p371_p10), %s244_s4, 4294967232  ;;  %s253_s7 = scalar_lea.sflag [#allocation7], %s243_s5 }
  0xc6   : > { %547 = dma.done.wait (!%p371_p10), %s253_s7, 64  }
  0xc7   : > { %549 = vsyncadd (!%p371_p10), %s253_s7, 4294967232  ;;  %s22_s14 = sadd.s32 1, %s572_s14   ;;  %s819_s9 = smov %s556_s10 }
  0xc8   : > { %p19_p12 = scmp.ge.s32.totalorder %s22_s14, 4   ;;  %s820_s10 = smov %s560_s11 }
  0xc9   : > { %s821_s11 = smov %s649_s23  ;;  %s822_s12 = smov %s568_s13 }
  0xca   : > { %s823_s13 = smov %s825_s17  ;;  %21 = sbr.rel (!%p19_p12) target bundleno = 8 (0x8), region = 86 }
  0xd1   :  { %258 = vsyncpa [#allocation3], 1 }
  0xd2   :  { %260 = vsyncpa [#allocation3 + $0x1], 1 }
  0xd3   :  { %261 = vsyncpa [#allocation4], 1 }
  0xd4   :  { %263 = vsyncpa [#allocation4 + $0x1], 1 }
  0xd5   :  { %264 = vsyncpa [#allocation7], 1 }
  0xd6   :  { %266 = vsyncpa [#allocation7 + $0x1], 1 }

</bundles_post_ra>
